<compile_context>
chip_gen: v5e
topology: v5e:2x2
jax: 0.10.0
libtpu: 0.0.40
codegen_flags: <defaults>
</compile_context>

<pallas_src>
import numpy as np

import jax
import jax.numpy as jnp
from jax.experimental import pallas as pl
from jax.experimental.pallas import tpu as pltpu


def _round_up(x, m):
    return ((x + m - 1) // m) * m


def _choose_tile(dim, max_tile, step=128):
    """Return (tile, padded_dim).

    Full-dim block (no padding) when the dim fits in max_tile; otherwise the
    multiple-of-`step` tile <= max_tile minimizing padded work, tie-breaking
    to the largest tile (fewest grid steps).
    """
    if dim <= max_tile:
        return dim, dim
    best_t, best_p = step, _round_up(dim, step)
    t = 2 * step
    while t <= max_tile:
        p = _round_up(dim, t)
        if p < best_p or (p == best_p and t > best_t):
            best_t, best_p = t, p
        t += step
    return best_t, best_p


def _linear_kernel_single_k(x_ref, wt_ref, b_ref, o_ref):
    """K fits in one tile: single MXU matmul + fused bias, no scratch."""
    acc = jnp.dot(x_ref[...], wt_ref[...], preferred_element_type=jnp.float32)
    o_ref[...] = (acc + b_ref[...].astype(jnp.float32)).astype(o_ref.dtype)


def _linear_kernel_reduce_k(x_ref, wt_ref, b_ref, o_ref, acc_ref):
    """One (tm, tn) output tile; grid axis 2 walks the K reduction."""
    k = pl.program_id(2)

    @pl.when(k == 0)
    def _():
        acc_ref[...] = jnp.zeros_like(acc_ref)

    acc_ref[...] += jnp.dot(
        x_ref[...], wt_ref[...], preferred_element_type=jnp.float32
    )

    @pl.when(k == pl.num_programs(2) - 1)
    def _():
        o_ref[...] = (acc_ref[...] + b_ref[...].astype(jnp.float32)).astype(o_ref.dtype)


def linear_pallas(x2d, weight, bias, *, tm_max=512, tn_max=512, tk_max=512):
    """y = x2d @ weight.T + bias  (torch nn.Linear semantics).

    x2d: (M, K); weight: (N, K); bias: (N,).  Returns (M, N).
    """
    M, K = x2d.shape
    N, K2 = weight.shape
    assert K == K2 and bias.shape == (N,)

    tm, Mp = _choose_tile(M, tm_max)
    tn, Np = _choose_tile(N, tn_max)
    tk, Kp = _choose_tile(K, tk_max)

    wt = weight.T  # (K, N): out_dim on the lane axis -> lane-dense stores.
    if (Kp, Np) != (K, N):
        wt = jnp.pad(wt, ((0, Kp - K), (0, Np - N)))
    b2d = bias.reshape(1, N)
    if Np != N:
        b2d = jnp.pad(b2d, ((0, 0), (0, Np - N)))
    if (Mp, Kp) != (M, K):
        x2d = jnp.pad(x2d, ((0, Mp - M), (0, Kp - K)))  # zeros: no effect on dot

    cost = pl.CostEstimate(
        flops=2 * Mp * Np * Kp,
        transcendentals=0,
        bytes_accessed=4 * (Mp * Kp + Kp * Np + Np + Mp * Np),
    )

    if Kp == tk:
        # Fast path: no reduction axis, no accumulator scratch.
        out = pl.pallas_call(
            _linear_kernel_single_k,
            out_shape=jax.ShapeDtypeStruct((Mp, Np), x2d.dtype),
            grid_spec=pltpu.PrefetchScalarGridSpec(
                num_scalar_prefetch=0,
                grid=(Mp // tm, Np // tn),
                in_specs=[
                    pl.BlockSpec((tm, tk), lambda i, j: (i, 0)),
                    pl.BlockSpec((tk, tn), lambda i, j: (0, j)),
                    pl.BlockSpec((1, tn), lambda i, j: (0, j)),
                ],
                out_specs=pl.BlockSpec((tm, tn), lambda i, j: (i, j)),
            ),
            compiler_params=pltpu.CompilerParams(
                dimension_semantics=("parallel", "parallel"),
                vmem_limit_bytes=48 * 1024 * 1024,
            ),
            cost_estimate=cost,
        )(x2d, wt, b2d)
    else:
        out = pl.pallas_call(
            _linear_kernel_reduce_k,
            out_shape=jax.ShapeDtypeStruct((Mp, Np), x2d.dtype),
            grid_spec=pltpu.PrefetchScalarGridSpec(
                num_scalar_prefetch=0,
                grid=(Mp // tm, Np // tn, Kp // tk),
                in_specs=[
                    pl.BlockSpec((tm, tk), lambda i, j, k: (i, k)),
                    pl.BlockSpec((tk, tn), lambda i, j, k: (k, j)),
                    pl.BlockSpec((1, tn), lambda i, j, k: (0, j)),
                ],
                out_specs=pl.BlockSpec((tm, tn), lambda i, j, k: (i, j)),
                scratch_shapes=[pltpu.VMEM((tm, tn), jnp.float32)],
            ),
            compiler_params=pltpu.CompilerParams(
                dimension_semantics=("parallel", "parallel", "arbitrary"),
                vmem_limit_bytes=48 * 1024 * 1024,
            ),
            cost_estimate=cost,
        )(x2d, wt, b2d)

    if (Mp, Np) != (M, N):
        out = out[:M, :N]
    return out


# ----------------------- plain-JAX distribution glue -----------------------

def symlog(x):
    return jnp.sign(x) * jnp.log(jnp.abs(x) + 1.0)


def symexp(x):
    return jnp.sign(x) * (jnp.exp(jnp.abs(x)) - 1.0)


class MSEDist:
    def __init__(self, mode, agg="sum"):
        self._mode = mode
        self._agg = agg

    @property
    def mean(self):
        return self._mode

    def mode(self):
        return self._mode

    def log_prob(self, value):
        assert self._mode.shape == value.shape, (self._mode.shape, value.shape)
        distance = (self._mode - value) ** 2
        axes = tuple(range(2, distance.ndim))
        if self._agg == "mean":
            loss = distance.mean(axes)
        elif self._agg == "sum":
            loss = distance.sum(axes)
        else:
            raise NotImplementedError(self._agg)
        return -loss


class SymlogDist:
    def __init__(self, mode, dims, dist="mse", agg="sum", tol=1e-8):
        self._mode = mode
        self._dims = tuple(-x for x in range(1, dims + 1))
        self._dist = dist
        self._agg = agg
        self._tol = tol

    def mode(self):
        return symexp(self._mode)

    def mean(self):
        return symexp(self._mode)

    def log_prob(self, value):
        assert self._mode.shape == value.shape
        if self._dist == "mse":
            distance = (self._mode - symlog(value)) ** 2
        elif self._dist == "abs":
            distance = jnp.abs(self._mode - symlog(value))
        else:
            raise NotImplementedError(self._dist)
        distance = jnp.where(distance < self._tol, 0.0, distance)
        if self._agg == "mean":
            loss = distance.mean(self._dims)
        elif self._agg == "sum":
            loss = distance.sum(self._dims)
        else:
            raise NotImplementedError(self._agg)
        return -loss


class DistLayer:
    """JAX/Pallas port of DistLayer.forward (linear head -> distribution)."""

    def __init__(self, in_dim, shape, dist="mse", min_std=0.1, max_std=1.0,
                 init_std=0.0, bias=True, *, key):
        self._in_dim = in_dim
        self._shape = tuple(shape) if isinstance(shape, (list, tuple)) else (shape,)
        self._dist = dist
        self._min_std = min_std
        self._max_std = max_std
        self._init_std = init_std
        out_dim = int(np.prod(self._shape))

        k_w, k_b = jax.random.split(key)
        bound = 1.0 / np.sqrt(in_dim)  # torch nn.Linear default init
        self.weight = jax.random.uniform(
            k_w, (out_dim, in_dim), minval=-bound, maxval=bound, dtype=jnp.float32)
        if bias:
            self.bias = jax.random.uniform(
                k_b, (out_dim,), minval=-bound, maxval=bound, dtype=jnp.float32)
        else:
            self.bias = jnp.zeros((out_dim,), dtype=jnp.float32)
        # TODO(synk): dist in ('normal','tanh_normal','trunc_normal','binary',
        # 'onehot','twohot','normal_unit_std') needs a second std head plus
        # torch.distributions sampling machinery (straight-through samples,
        # Truncated/Squashed Normal, OneHot, TwoHot, Bernoulli) — host-side
        # distribution objects with no Pallas-kernel equivalent; only the
        # deterministic heads ('mse', 'symlog_mse') are ported here.

    def __call__(self, inputs):
        lead = inputs.shape[:-1]
        x2d = inputs.reshape(-1, self._in_dim)       # free reshape, no copy
        out2d = linear_pallas(x2d, self.weight, self.bias)
        out = out2d.reshape(lead + self._shape)
        if self._dist == "mse":
            return MSEDist(out)
        if self._dist == "symlog_mse":
            return SymlogDist(out, len(self._shape), "mse")
        raise NotImplementedError(self._dist)


if __name__ == "__main__":
    key = jax.random.PRNGKey(0)
    k_param, k_in = jax.random.split(key)

    batch, seq, in_dim = 2, 8, 32
    shape = (16,)

    layer = DistLayer(in_dim, shape, dist="mse", key=k_param)
    inputs = jax.random.normal(k_in, (batch, seq, in_dim), dtype=jnp.float32)

    dist = layer(inputs)
    mode = jax.block_until_ready(dist.mode())

    # Pure-JAX reference for the linear head (torch: x @ W.T + b).
    ref = (inputs.reshape(-1, in_dim) @ layer.weight.T + layer.bias).reshape(
        (batch, seq) + shape)

    assert mode.shape == (batch, seq) + shape
    assert jnp.allclose(mode, ref, atol=1e-4, rtol=1e-4), "mismatch vs reference"

    # Exercise the distribution wrappers (plain JAX; no kernel work).
    lp = dist.log_prob(ref)
    assert lp.shape == (batch, seq)

    sym_layer = DistLayer(in_dim, shape, dist="symlog_mse", key=k_param)
    sym_dist = sym_layer(inputs)
    sym_mode = jax.block_until_ready(sym_dist.mode())
    assert sym_mode.shape == (batch, seq) + shape

    print("KERNEL_OK")
</pallas_src>

<mosaic_0001>
module attributes {stable_mosaic.version = 11 : i64} {
  func.func @_linear_kernel_single_k(%arg0: i32, %arg1: i32, %arg2: memref<16x32xf32, #tpu.memory_space<vmem>>, %arg3: memref<32x16xf32, #tpu.memory_space<vmem>>, %arg4: memref<1x16xf32, #tpu.memory_space<vmem>>, %arg5: memref<16x16xf32, #tpu.memory_space<vmem>>) attributes {dimension_semantics = [#tpu.dimension_semantics<parallel>, #tpu.dimension_semantics<parallel>], iteration_bounds = array<i64: 1, 1>, scalar_prefetch = 0 : i64, scratch_operands = 0 : i64, tpu.core_type = #tpu.core_type<tc>, window_params = [{transform_indices = @transform_0, window_bounds = array<i64: 16, 32>}, {transform_indices = @transform_1, window_bounds = array<i64: 32, 16>}, {transform_indices = @transform_2, window_bounds = array<i64: 1, 16>}, {transform_indices = @transform_3, window_bounds = array<i64: 16, 16>}]} {
    %c0 = arith.constant 0 : index
    %c0_0 = arith.constant 0 : index
    %0 = vector.load %arg2[%c0, %c0_0] : memref<16x32xf32, #tpu.memory_space<vmem>>, vector<16x32xf32>
    %c0_1 = arith.constant 0 : index
    %c0_2 = arith.constant 0 : index
    %1 = vector.load %arg3[%c0_1, %c0_2] : memref<32x16xf32, #tpu.memory_space<vmem>>, vector<32x16xf32>
    %cst = arith.constant dense<0.000000e+00> : vector<16x16xf32>
    %2 = tpu.matmul %0, %1, %cst {dimension_numbers = #tpu.dot_dimension_numbers<[1], [0], [0], [1], [0, 0, 1, 1], [], []>} : vector<16x32xf32>, vector<32x16xf32>, vector<16x16xf32> -> vector<16x16xf32>
    %c0_3 = arith.constant 0 : index
    %c0_4 = arith.constant 0 : index
    %3 = vector.load %arg4[%c0_3, %c0_4] : memref<1x16xf32, #tpu.memory_space<vmem>>, vector<1x16xf32>
    %4 = vector.broadcast %3 : vector<1x16xf32> to vector<16x16xf32>
    %5 = arith.addf %2, %4 : vector<16x16xf32>
    %c0_5 = arith.constant 0 : index
    %c0_6 = arith.constant 0 : index
    %6 = vector.load %arg5[%c0_5, %c0_6] : memref<16x16xf32, #tpu.memory_space<vmem>>, vector<16x16xf32>
    tpu.vector_store %arg5[%c0_5, %c0_6], %5 {strides = array<i32>} : memref<16x16xf32, #tpu.memory_space<vmem>>, vector<16x16xf32>,
    return
  }
  func.func @transform_0(%arg0: i32, %arg1: i32) -> (i32, i32) {
    %c0_i32 = arith.constant 0 : i32
    %c0_i32_0 = arith.constant 0 : i32
    return %arg0, %c0_i32 : i32, i32
  }
  func.func @transform_1(%arg0: i32, %arg1: i32) -> (i32, i32) {
    %c0_i32 = arith.constant 0 : i32
    %c0_i32_0 = arith.constant 0 : i32
    return %c0_i32, %arg1 : i32, i32
  }
  func.func @transform_2(%arg0: i32, %arg1: i32) -> (i32, i32) {
    %c0_i32 = arith.constant 0 : i32
    %c0_i32_0 = arith.constant 0 : i32
    return %c0_i32, %arg1 : i32, i32
  }
  func.func @transform_3(%arg0: i32, %arg1: i32) -> (i32, i32) {
    %c0_i32 = arith.constant 0 : i32
    return %arg0, %arg1 : i32, i32
  }
}

</mosaic_0001>

<bundles_post_ra>
// kernel: tpu_custom_call.1
= control target key start
LH: loop header
LB: loop body
LE: loop exit
PB: predicated region body
PF: predicated region fallthrough
CT: control target
= control target key end

     0   :  { %s159_s0 = inlined_call_operand.vmem [shape: f32[16,32], index: 0, kind: input, shape index: {}]   ;;  %s160_s1 = inlined_call_operand.vmem [shape: f32[32,16], index: 1, kind: input, shape index: {}]   ;;  %s161_s2 = inlined_call_operand.vmem [shape: f32[1,16], index: 2, kind: input, shape index: {}]   ;;  %s162_s3 = inlined_call_operand.hbm [shape: f32[16,16], index: 3, kind: output, shape index: {}]  }
   0x1   :  { %v20_v0 = vld [vmem:[%s160_s1 + $0x18] sm:$0xff]  ;;  %v19_v1 = vld [vmem:[%s160_s1 + $0x10] sm:$0xff]  ;;  %v18_v2 = vld [vmem:[%s160_s1 + $0x8] sm:$0xff] }
   0x2   :  { %44 = vmatpush.msra.mxu0 %v20_v0  ;;  %78 = vmatpush.msra.mxu1 %v20_v0 }
   0x3   :  { %8 = vsyncpa [#allocation3], 0  ;;  %v17_v3 = vld [vmem:[%s160_s1] sm:$0xff]  ;;  %vm25_vm0 = vcmask 261120   ;;  %v16_v5 = vld [vmem:[%s159_s0 + $0x8] sm:$0xff]  ;;  %s112_s1 = smov [#allocation2]  }
   0x4   :  { %45 = vmatpush.msra.mxu0 %v19_v1  ;;  %79 = vmatpush.msra.mxu1 %v19_v1  ;;  %v15_v4 = vld [vmem:[%s159_s0] sm:$0xff]  ;;  %s62_s26 = sshll.u32 %s112_s1, 4  ;;  %s64_s29 = sshll.u32 %s162_s3, 4  ;;  %vm55_vm1 = vcmask 130048   ;;  %s63_s26 = int_to_ptr.vmem [resolvable:$true] %s62_s26  ;;  %s65_s29 = int_to_ptr.hbm [resolvable:$true] %s64_s29 }
   0x5   :  { %v85_v6 = vld [vmem:[%s161_s2] ss:$0 sm:$0xff]  ;;  %s113_s0 = smov 128   ;;  %s114_s30 = smov 8  }
   0x6   :  { %46 = vmatpush.msra.mxu0 %v18_v2  ;;  %80 = vmatpush.msra.mxu1 %v18_v2 }
   0x8   :  { %47 = vmatpush.msra.mxu0 %v17_v3  ;;  %81 = vmatpush.msra.mxu1 %v17_v3 }
   0x9   :  { %76 = vmatmul.msk.f32.vlgmr.msra.gmra.mxu0 %vm25_vm0, %v15_v4  ;;  %77 = vmatmul.msk.f32.vlgmr.msra.gmra.mxu1 %vm25_vm0, %v16_v5 }
  0x86   :  { %v49_v7 = vpop.f32.mrf.mxu0  ;;  %v52_v8 = vpop.f32.mrf.mxu1 }
  0x87   :  { %v50_v9 = vadd.f32 %v85_v6, %v49_v7  ;;  %v53_v10 = vadd.f32 %v85_v6, %v52_v8 }
  0x89   :  { %56 = vst.msk [vmem:[#allocation2] sm:$0xff] %vm55_vm1, %v50_v9 }
  0x8a   :  { %57 = vst.msk [vmem:[#allocation2 + $0x8] sm:$0xff] %vm55_vm1, %v53_v10 }
  0x8b   :  { %70 = dma.vmem_to_hbm [thread:$0]  %s63_s26, 256, %s65_s29, [#allocation3], %s113_s0, %s113_s0, %s114_s30  }
  0x8c   :  { %110 = dma.done.wait [#allocation3], 256  }
  0x8d   :  { %111 = vsyncadd [#allocation3], 4294967040 }
  0x8e   :  { %75 = vsyncpa [#allocation3], 1 }

</bundles_post_ra>
